<compile_context>
chip_gen: v6e
topology: v6e:2x2x1
jax: 0.10.0
libtpu: 0.0.40
codegen_flags: <defaults>
</compile_context>

<pallas_src>
import jax
import jax.numpy as jnp
from jax.experimental import pallas as pl
from jax.experimental.pallas import tpu as pltpu

LN_EPS = 1e-5


def _patch_merging_kernel(x_ref, w_ref, wsum_ref, b_ref, o_ref):
    """Fused LayerNorm(4C) + Linear(4C -> 2C), LN folded through the matmul.

    x_ref:    (4C, TP) merged-patch features (storage dtype); features on
              sublanes, spatial positions on lanes.
    w_ref:    (2C, 4C) LN-gamma-folded, pre-transposed linear weight.
    wsum_ref: (2C, 1)  row sums of w_ref, f32.
    b_ref:    (2C, 1)  beta @ W (LN shift folded through the linear), f32.
    o_ref:    (2C, TP) output tile, already channel-major (NCHW-flat).
    """
    x = x_ref[...]
    xf = x.astype(jnp.float32)          # stats only; matmul consumes raw x
    inv_c4 = jnp.float32(1.0 / x.shape[0])
    s1 = jnp.sum(xf, axis=0, keepdims=True)             # (1, TP)
    s2 = jnp.sum(xf * xf, axis=0, keepdims=True)        # (1, TP)
    mean = s1 * inv_c4
    # Single-pass variance; f32 accumulation, clamped for safety.  Garbage in
    # padded lanes of a ragged last tile stays confined per-lane and is never
    # stored (masked vst), so no cross-lane mixing can leak NaN/Inf.
    var = jnp.maximum(s2 * inv_c4 - mean * mean, 0.0)
    rstd = jax.lax.rsqrt(var + LN_EPS)

    precision = (jax.lax.Precision.HIGHEST
                 if x.dtype == jnp.float32 else jax.lax.Precision.DEFAULT)
    acc = jnp.dot(w_ref[...], x, preferred_element_type=jnp.float32,
                  precision=precision)                   # (2C, TP) f32
    out = (acc - wsum_ref[...] * mean) * rstd + b_ref[...]
    o_ref[...] = out.astype(o_ref.dtype)


def _rup(v, m):
    return -(-int(v) // int(m)) * int(m)


def _vmem_capacity_bytes():
    # Conservative fallback (v7x per-TC VMEM) if the trace-time query fails.
    try:
        return int(pltpu.get_tpu_info().vmem_capacity_bytes)
    except Exception:
        return 64 << 20


def _choose_tp(P, B, itemsize, C4, C2, vmem_cap, tile_p=None):
    """Spatial (lane) tile size: as large as the VMEM budget allows, with
    >= 4 total grid steps when possible, snapped to a divisor of P nearby."""
    sub = max(8, 32 // itemsize)
    lane_p = _rup(P, 128)
    if tile_p is not None:
        return min(_rup(tile_p, 128), lane_p)
    # Double-buffered x/out tiles must fit next to the (also double-buffered)
    # constant operands, with headroom for Mosaic internal scratch.
    const_bytes = (2 * _rup(C2, sub) * _rup(C4, 128) * itemsize
                   + 4 * _rup(C2, 8) * 128 * 4)
    bytes_per_pos = 2 * (_rup(C4, sub) + _rup(C2, sub)) * itemsize
    budget = max(int(0.55 * vmem_cap) - const_bytes, 128 * bytes_per_pos)
    tp_vmem = max(128, (budget // bytes_per_pos) // 128 * 128)
    tp_gen = 2048 if vmem_cap >= (96 << 20) else 1024    # v5e/v6e vs v7x
    tp = min(tp_vmem, tp_gen, lane_p)
    # Keep >= 4 total grid steps so the input/output pipeline overlaps.
    while tp > 128 and B * (-(-P // tp)) < 4:
        tp -= 128
    # Prefer a nearby tile that divides P exactly (unmasked store every step).
    for cand in range(tp, max(128, tp - 3 * 128) - 1, -128):
        if P % cand == 0:
            return cand
    return tp


def patch_merging_premerged(feat_t, gamma, beta, w, *, tile_p=None):
    """PatchMerging on a pre-merged, feature-major slab (no layout pass).

    feat_t: [B, 4C, P]  merged features in this module's unfold order
                        f = c*4 + hi*2 + wi, P = (H//2)*(W//2).
    gamma, beta: [4C]   LayerNorm affine.
    w: [4C, 2C]         linear weight (= torch_linear.weight.T).
    returns [B, 2C, P]  channel-major output slab.
    """
    B, C4, P = feat_t.shape
    C2 = C4 // 2
    dt = feat_t.dtype
    itemsize = jnp.dtype(dt).itemsize

    # Fold the LayerNorm affine into the linear layer at trace time (in a real
    # model these three small arrays are precomputed once per checkpoint).
    w32 = w.astype(jnp.float32)
    w_t = (gamma.astype(jnp.float32)[:, None] * w32).T.astype(dt)       # [2C,4C]
    wsum = jnp.sum(w_t.astype(jnp.float32), axis=1, keepdims=True)      # [2C,1]
    bias = (beta.astype(jnp.float32) @ w32).reshape(C2, 1)              # [2C,1]

    vmem_cap = _vmem_capacity_bytes()
    TP = _choose_tp(P, B, itemsize, C4, C2, vmem_cap, tile_p)
    grid = (B, pl.cdiv(P, TP))

    # VMEM budget: each operand is double-buffered by the pipeline; cap the
    # scoped limit at 75% of this generation's physical per-core VMEM.
    sub = max(8, 32 // itemsize)
    est = (2 * _rup(C4, sub) * _rup(TP, 128) * itemsize       # x tile
           + 2 * _rup(C2, sub) * _rup(TP, 128) * itemsize     # out tile
           + 2 * _rup(C2, sub) * _rup(C4, 128) * itemsize     # folded weight
           + 4 * _rup(C2, 8) * 128 * 4)                       # wsum + bias (f32)
    vmem_limit = int(min(max(est + (8 << 20), 32 << 20), int(0.75 * vmem_cap)))

    # TODO(synk): w_t / wsum / bias are grid-constant yet still get two
    # pipeline buffers each; pl.Buffered(1) would reclaim that VMEM on v7x but
    # is not applied here for lowering compatibility (it is budgeted above).
    out_flat = pl.pallas_call(
        _patch_merging_kernel,
        out_shape=jax.ShapeDtypeStruct((B, C2, P), dt),
        grid=grid,
        in_specs=[
            pl.BlockSpec((None, C4, TP), lambda b, p: (b, 0, p)),
            pl.BlockSpec((C2, C4), lambda b, p: (0, 0)),
            pl.BlockSpec((C2, 1), lambda b, p: (0, 0)),
            pl.BlockSpec((C2, 1), lambda b, p: (0, 0)),
        ],
        out_specs=pl.BlockSpec((None, C2, TP), lambda b, p: (b, 0, p)),
        compiler_params=pltpu.CompilerParams(
            dimension_semantics=("parallel", "parallel"),
            vmem_limit_bytes=vmem_limit,
        ),
    )(feat_t, w_t, wsum, bias)
    return out_flat


def patch_merging(x, gamma, beta, w, *, tile_p=None):
    """PatchMerging forward from NCHW input (matches the PyTorch module).

    x: [B, C, H, W]; gamma, beta: [4C]; w: [4C, 2C] (= torch weight.T).
    returns [B, 2C, H//2, W//2].

    NOTE: merged feature order is this module's unfold order
    f = c*4 + hi*2 + wi; weights from the *official* Swin PatchMerging
    (slice-and-concat, f = phase*C + c) must be row-permuted before folding.
    """
    B, C, H, W = x.shape
    Hh, Wh = H // 2, W // 2
    C4, C2 = 4 * C, 2 * C
    P = Hh * Wh

    # torch.unfold(step=2) drops a trailing odd row/column.
    x = x[:, :, : 2 * Hh, : 2 * Wh]

    # Single layout pass: NCHW -> feature-major merged slab [B, 4C, Hh*Wh].
    # reshape/transpose/reshape lowers to ONE tiled XLA transpose (the
    # reshapes only split/merge contiguous dims); the kernel writes
    # channel-major tiles so no output transpose is needed afterwards.
    # TODO(synk): this remaining input shuffle is removable only if the
    # producer supplies channels-last / pre-merged data (use
    # `patch_merging_premerged`); an in-kernel lane-stride-2 deinterleave of W
    # does not lower cleanly on TPU for f32 (a 2xbf16->u32 bitcast trick
    # exists for bf16 only).
    feat_t = (
        x.reshape(B, C, Hh, 2, Wh, 2)
        .transpose(0, 1, 3, 5, 2, 4)
        .reshape(B, C4, P)
    )

    out_flat = patch_merging_premerged(feat_t, gamma, beta, w, tile_p=tile_p)
    # [B, 2C, Hh*Wh] is already channel-major: final NCHW shape is a free view.
    return out_flat.reshape(B, C2, Hh, Wh)


def _reference(x, gamma, beta, w):
    """Pure-JAX reference mirroring the PyTorch module (unfused)."""
    B, C, H, W = x.shape
    Hh, Wh = H // 2, W // 2
    x = x[:, :, : 2 * Hh, : 2 * Wh]
    xh = jnp.transpose(x, (0, 2, 3, 1)).reshape(B, Hh, 2, Wh, 2, C)
    feat = jnp.transpose(xh, (0, 1, 3, 5, 2, 4)).reshape(B, Hh, Wh, 4 * C)
    mean = jnp.mean(feat, axis=-1, keepdims=True)
    var = jnp.mean((feat - mean) ** 2, axis=-1, keepdims=True)
    xn = (feat - mean) / jnp.sqrt(var + LN_EPS) * gamma + beta
    out = jnp.einsum("bhwf,fo->bhwo", xn, w,
                     precision=jax.lax.Precision.HIGHEST)
    return jnp.transpose(out, (0, 3, 1, 2))


if __name__ == "__main__":
    key = jax.random.PRNGKey(0)

    def _run_case(case_key, B, C, H, W, dtype=jnp.float32, atol=2e-3, rtol=2e-3):
        k_x, k_g, k_b, k_w = jax.random.split(case_key, 4)
        x = jax.random.normal(k_x, (B, C, H, W), dtype=jnp.float32).astype(dtype)
        gamma = 1.0 + 0.1 * jax.random.normal(k_g, (4 * C,), dtype=jnp.float32)
        beta = 0.1 * jax.random.normal(k_b, (4 * C,), dtype=jnp.float32)
        w = jax.random.normal(k_w, (4 * C, 2 * C), dtype=jnp.float32) / jnp.sqrt(4.0 * C)

        out = jax.block_until_ready(patch_merging(x, gamma, beta, w))
        ref = _reference(x.astype(jnp.float32), gamma, beta, w)
        assert out.shape == (B, 2 * C, H // 2, W // 2), out.shape
        assert jnp.allclose(out.astype(jnp.float32), ref, atol=atol, rtol=rtol), (
            f"mismatch vs reference for case {(B, C, H, W, dtype)}"
        )

    k1, k2, k3 = jax.random.split(key, 3)
    # Small canonical config (f32).
    _run_case(k1, B=2, C=4, H=16, W=16)
    # Ragged grid (P=625 not a multiple of 128) + odd spatial size
    # (torch.unfold drops the trailing row/column); exercises masked stores.
    _run_case(k2, B=1, C=8, H=51, W=51)
    # bf16 storage path: raw bf16 tile on the MXU, f32 stats/accumulation.
    _run_case(k3, B=2, C=8, H=16, W=16, dtype=jnp.bfloat16, atol=5e-2, rtol=5e-2)

    print("KERNEL_OK")
</pallas_src>

<mosaic_0001>
module attributes {stable_mosaic.version = 11 : i64} {
  func.func @_patch_merging_kernel(%arg0: i32, %arg1: i32, %arg2: memref<1x16x128xf32, #tpu.memory_space<vmem>>, %arg3: memref<8x16xf32, #tpu.memory_space<vmem>>, %arg4: memref<8x1xf32, #tpu.memory_space<vmem>>, %arg5: memref<8x1xf32, #tpu.memory_space<vmem>>, %arg6: memref<1x8x128xf32, #tpu.memory_space<vmem>>) attributes {dimension_semantics = [#tpu.dimension_semantics<parallel>, #tpu.dimension_semantics<parallel>], iteration_bounds = array<i64: 2, 1>, scalar_prefetch = 0 : i64, scratch_operands = 0 : i64, tpu.core_type = #tpu.core_type<tc>, window_params = [{transform_indices = @transform_0, window_bounds = array<i64: 1, 16, 128>}, {pipeline_mode = #tpu.pipeline_mode<synchronous>, transform_indices = @transform_1, window_bounds = array<i64: 8, 16>}, {pipeline_mode = #tpu.pipeline_mode<synchronous>, transform_indices = @transform_2, window_bounds = array<i64: 8, 1>}, {pipeline_mode = #tpu.pipeline_mode<synchronous>, transform_indices = @transform_3, window_bounds = array<i64: 8, 1>}, {transform_indices = @transform_4, window_bounds = array<i64: 1, 8, 128>}]} {
    %c0 = arith.constant 0 : index
    %c0_0 = arith.constant 0 : index
    %c0_1 = arith.constant 0 : index
    %0 = vector.load %arg2[%c0, %c0_0, %c0_1] : memref<1x16x128xf32, #tpu.memory_space<vmem>>, vector<1x16x128xf32>
    %1 = vector.shape_cast %0 : vector<1x16x128xf32> to vector<16x128xf32>
    %cst = arith.constant dense<0.000000e+00> : vector<128xf32>
    %2 = vector.multi_reduction <add>, %1, %cst [0] : vector<16x128xf32> to vector<128xf32>
    %3 = vector.shape_cast %2 : vector<128xf32> to vector<1x128xf32>
    %4 = arith.mulf %1, %1 : vector<16x128xf32>
    %cst_2 = arith.constant dense<0.000000e+00> : vector<128xf32>
    %5 = vector.multi_reduction <add>, %4, %cst_2 [0] : vector<16x128xf32> to vector<128xf32>
    %6 = vector.shape_cast %5 : vector<128xf32> to vector<1x128xf32>
    %cst_3 = arith.constant 6.250000e-02 : f32
    %7 = vector.broadcast %cst_3 : f32 to vector<1x128xf32>
    %8 = arith.mulf %3, %7 : vector<1x128xf32>
    %cst_4 = arith.constant 6.250000e-02 : f32
    %9 = vector.broadcast %cst_4 : f32 to vector<1x128xf32>
    %10 = arith.mulf %6, %9 : vector<1x128xf32>
    %11 = arith.mulf %8, %8 : vector<1x128xf32>
    %12 = arith.subf %10, %11 : vector<1x128xf32>
    %cst_5 = arith.constant 0.000000e+00 : f32
    %13 = vector.broadcast %cst_5 : f32 to vector<1x128xf32>
    %14 = arith.maximumf %12, %13 : vector<1x128xf32>
    %cst_6 = arith.constant 9.99999974E-6 : f32
    %15 = vector.broadcast %cst_6 : f32 to vector<1x128xf32>
    %16 = arith.addf %14, %15 : vector<1x128xf32>
    %17 = math.rsqrt %16 : vector<1x128xf32>
    %c0_7 = arith.constant 0 : index
    %c0_8 = arith.constant 0 : index
    %18 = vector.load %arg3[%c0_7, %c0_8] : memref<8x16xf32, #tpu.memory_space<vmem>>, vector<8x16xf32>
    %cst_9 = arith.constant dense<0.000000e+00> : vector<8x128xf32>
    %19 = tpu.matmul %18, %1, %cst_9 {dimension_numbers = #tpu.dot_dimension_numbers<[1], [0], [0], [1], [0, 0, 1, 1], [], []>, precision = #tpu.contract_precision<fp32>} : vector<8x16xf32>, vector<16x128xf32>, vector<8x128xf32> -> vector<8x128xf32>
    %c0_10 = arith.constant 0 : index
    %c0_11 = arith.constant 0 : index
    %20 = vector.load %arg4[%c0_10, %c0_11] : memref<8x1xf32, #tpu.memory_space<vmem>>, vector<8x1xf32>
    %21 = vector.broadcast %20 : vector<8x1xf32> to vector<8x128xf32>
    %22 = vector.broadcast %8 : vector<1x128xf32> to vector<8x128xf32>
    %23 = arith.mulf %21, %22 : vector<8x128xf32>
    %24 = arith.subf %19, %23 : vector<8x128xf32>
    %25 = vector.broadcast %17 : vector<1x128xf32> to vector<8x128xf32>
    %26 = arith.mulf %24, %25 : vector<8x128xf32>
    %c0_12 = arith.constant 0 : index
    %c0_13 = arith.constant 0 : index
    %27 = vector.load %arg5[%c0_12, %c0_13] : memref<8x1xf32, #tpu.memory_space<vmem>>, vector<8x1xf32>
    %28 = vector.broadcast %27 : vector<8x1xf32> to vector<8x128xf32>
    %29 = arith.addf %26, %28 : vector<8x128xf32>
    %c0_14 = arith.constant 0 : index
    %c0_15 = arith.constant 0 : index
    %c0_16 = arith.constant 0 : index
    %30 = vector.load %arg6[%c0_14, %c0_15, %c0_16] : memref<1x8x128xf32, #tpu.memory_space<vmem>>, vector<1x8x128xf32>
    %31 = vector.shape_cast %30 : vector<1x8x128xf32> to vector<8x128xf32>
    %32 = vector.shape_cast %29 : vector<8x128xf32> to vector<1x8x128xf32>
    tpu.vector_store %arg6[%c0_14, %c0_15, %c0_16], %32 {strides = array<i32>} : memref<1x8x128xf32, #tpu.memory_space<vmem>>, vector<1x8x128xf32>,
    return
  }
  func.func @transform_0(%arg0: i32, %arg1: i32) -> (i32, i32, i32) {
    %c0_i32 = arith.constant 0 : i32
    %c0_i32_0 = arith.constant 0 : i32
    return %arg0, %c0_i32, %arg1 : i32, i32, i32
  }
  func.func @transform_1(%arg0: i32, %arg1: i32) -> (i32, i32) {
    %c0_i32 = arith.constant 0 : i32
    %c0_i32_0 = arith.constant 0 : i32
    %c0_i32_1 = arith.constant 0 : i32
    return %c0_i32, %c0_i32_0 : i32, i32
  }
  func.func @transform_2(%arg0: i32, %arg1: i32) -> (i32, i32) {
    %c0_i32 = arith.constant 0 : i32
    %c0_i32_0 = arith.constant 0 : i32
    %c0_i32_1 = arith.constant 0 : i32
    return %c0_i32, %c0_i32_0 : i32, i32
  }
  func.func @transform_3(%arg0: i32, %arg1: i32) -> (i32, i32) {
    %c0_i32 = arith.constant 0 : i32
    %c0_i32_0 = arith.constant 0 : i32
    %c0_i32_1 = arith.constant 0 : i32
    return %c0_i32, %c0_i32_0 : i32, i32
  }
  func.func @transform_4(%arg0: i32, %arg1: i32) -> (i32, i32, i32) {
    %c0_i32 = arith.constant 0 : i32
    %c0_i32_0 = arith.constant 0 : i32
    return %arg0, %c0_i32, %arg1 : i32, i32, i32
  }
}

</mosaic_0001>

<bundles_post_ra>
// kernel: tpu_custom_call.1
= control target key start
LH: loop header
LB: loop body
LE: loop exit
PB: predicated region body
PF: predicated region fallthrough
CT: control target
= control target key end

     0   :  { %9 = vsyncpa [#allocation3], 0  ;;  %s1270_s0 = inlined_call_operand.hbm [shape: f32[2,16,64], index: 0, kind: input, shape index: {}]   ;;  %s1271_s1 = inlined_call_operand.vmem [shape: f32[8,16], index: 1, kind: input, shape index: {}]   ;;  %s1272_s2 = inlined_call_operand.vmem [shape: f32[8,1], index: 2, kind: input, shape index: {}]   ;;  %s1273_s3 = inlined_call_operand.vmem [shape: f32[8,1], index: 3, kind: input, shape index: {}]   ;;  %s1274_s4 = inlined_call_operand.hbm [shape: f32[2,8,64], index: 4, kind: output, shape index: {}]  }
   0x1   :  { %11 = vsyncpa [#allocation3 + $0x1], 0 }
   0x2   :  { %12 = vsyncpa [#allocation4], 0 }
   0x3   :  { %14 = vsyncpa [#allocation4 + $0x1], 0  ;;  %s1122_s15 = smov 0   ;;  %s1124_s16 = smov 0  }
   0x4   :  { %s1126_s17 = smov 0   ;;  %s1128_s18 = smov 0  }
   0x5   :  { %s1130_s19 = smov 0   ;;  %s1132_s20 = smov 0  }
   0x6 LB: > { %s835_s21 = sadd.s32 4294967295, %s1088_s20   ;;  %s836_s22 = sadd.s32 4294967294, %s1088_s20   ;;  %s1088_s20 = sphi %s1132_s20, %s20_s20   ;;  %s1084_s19 = sphi %s1130_s19, %s1285_s19   ;;  %s1080_s18 = sphi %s1128_s18, %s1284_s18   ;;  %s1076_s17 = sphi %s1126_s17, %s1283_s17   ;;  %s1072_s16 = sphi %s1124_s16, %s1282_s16   ;;  %s1068_s15 = sphi %s1122_s15, %s1281_s15  }
   0x7   : > { %s32_s23 = sadd.s32 1, %s1084_s19  ;;  %s41_s24 = sadd.s32 1, %s1076_s17 }
   0x8   : > { %p34_p0 = scmp.ge.s32.totalorder %s32_s23, 2  ;;  %p48_p1 = scmp.ne.s32.totalorder %s1076_s17, %s1072_s16 }
   0x9   : > { %p49_p2 = scmp.eq.s32.totalorder %s1088_s20, 0  ;;  %p54_p3 = scmp.ne.s32.totalorder %s1072_s16, %s1068_s15 }
   0xa   : > { %s1287_s23 = smov (%p34_p0, %s32_s23), 0  ;;  %p55_p5 = scmp.eq.s32.totalorder %s835_s21, 0 }
   0xb   : > { %p1163_p4 = por %p49_p2, %p48_p1  ;;  %s36_s26 = ssub.s32 %s1084_s19, %s1287_s23 }
   0xc   : > { %p143_p6 = scmp.eq.s32.totalorder %s835_s21, 1  ;;  %p39_p7 = scmp.eq.s32.totalorder %s36_s26, 0 }
   0xd   : > { %p1169_p8 = por %p55_p5, %p54_p3  ;;  %p149_p10 = scmp.eq.s32.totalorder %s836_s22, 1 }
   0xe   : > { %p1173_p9 = por %p143_p6, %p48_p1  ;;  %p922_p13 = scmp.lt.s32.totalorder %s1088_s20, 2 }
   0xf   : > { %s1178_s29 = scalar_select %p39_p7, %s1076_s17, %s41_s24  }
  0x10   : > { %p1180_p11 = por %p149_p10, %p54_p3  ;;  %s178_s5 = sand.u32 1, %s1076_s17  }
  0x11   : > { %s839_s6 = sshll.u32 %s178_s5, 4  ;;  %s849_s7 = sshll.u32 %s1084_s19, 8 }
  0x12   : > { %s189_s10 = scalar_lea.hbm %s1270_s0, %s849_s7  ;;  %s182_s11 = scalar_lea.vmem [#allocation2], %s839_s6 }
  0x13   : > { %s190_s12 = sshll.u32 %s182_s11, 4  ;;  %p1193_p0 = pnand %p922_p13, %p1163_p4  ;;  %s191_s12 = int_to_ptr.vmem [resolvable:$true] %s190_s12 }
  0x14   : > { %p842_p1 = scmp.ge.s32.totalorder %s1088_s20, 1  ;;  %s179_s14 = scalar_lea.sflag [#allocation3], %s178_s5 }
  0x15   : > { %p982_p2 = pneg %p1193_p0  ;;  %s993_s21 = scalar_lea.vmem %s191_s12, 256 }
  0x16   : > { %p994_p3 = scmp.ne.s32.totalorder %s191_s12, %s993_s21  ;;  %s1090_s22 = smov [#allocation2]  }
  0x17   : > { %s998_s24 = sshll.u32 %s1090_s22, 4  ;;  %s999_s24 = int_to_ptr.vmem [resolvable:$false] %s998_s24 }
  0x18   : > { %p996_p5 = pnand %p994_p3, %p982_p2  ;;  %s1000_s26 = scalar_lea.vmem %s999_s24, 512 }
  0x19   : > { %p1001_p7 = scmp.lt.s32.totalorder %s191_s12, %s999_s24  ;;  %p1002_p10 = scmp.lt.s32.totalorder %s1000_s26, %s993_s21 }
  0x1a   : > { %p997_p6 = pneg %p996_p5 }
  0x1b   : > { %p1003_p12 = por %p1002_p10, %p1001_p7 }
  0x1d   : > { %p1004_p4 = pnand %p1003_p12, %p997_p6 }
  0x1f   : > { %1007 = shalt.err (!%p1004_p4)
}
  0x20   : > { %s1091_s25 = smov 128   ;;  %s1092_s5 = smov 8  }
  0x21   : > { %917 = dma.hbm_to_vmem [thread:$0]  (!%p1193_p0), %s189_s10, 256, %s191_s12, %s179_s14, %s1091_s25, %s1091_s25, %s1092_s5  }
  0x22   : > { %p198_p13 = scmp.lt.s32.totalorder %s1088_s20, 3 }
  0x24   : > { %p199_p2 = pnand %p842_p1, %p198_p13 }
  0x25   : > { %s1206_s6 = sand.u32 (!%p199_p2), 1, %s1072_s16  }
  0x26   : > { %202 = sbr.rel (%p199_p2) target bundleno = 284 (0x11c), region = 36  ;;  %s843_s7 = sshll.u32 (!%p199_p2), %s1206_s6, 4 }
  0x27   : > { %s205_s8 = scalar_lea.sflag (!%p199_p2), [#allocation3], %s1206_s6  ;;  %s208_s9 = scalar_lea.vmem (!%p199_p2), [#allocation2], %s843_s7 }
  0x2b   : > { %1059 = dma.done.wait (%p1169_p8), %s205_s8, 256  }
  0x2c   : > { %1061 = vsyncadd (%p1169_p8), %s205_s8, 4294967040  ;;  %v1093_v0 = vmov 0.0   ;;  %vm1094_vm0 = vmmov 0   ;;  %v1095_v1 = vmov 0   ;;  %vm259_vm1 = vcmask 130048   ;;  %v234_v2 = vld [vmem:[%s208_s9 + $0x8] sm:$0xff] }
  0x2d   : > { %868 = vmatprep.subr.mxu0 %v1093_v0  ;;  %875 = vmatprep.subr.mxu1 %v1093_v0  ;;  %v233_v3 = vld [vmem:[%s208_s9] sm:$0xff]  ;;  %v292_v5 = vand.u32 4294901760, %v234_v2  ;;  %v243_v23 = vmul.f32 %v234_v2, %v234_v2  ;;  %s844_s21 = sshll.u32 %s1206_s6, 3  ;;  %s846_s22 = sshll.u32 %s1080_s18, 7 }
  0x2e   : > { %872 = vmatprep.mubr.msk.f32.mxu0 %vm1094_vm0, %v1093_v0  ;;  %879 = vmatprep.mubr.msk.f32.mxu1 %vm1094_vm0, %v1093_v0  ;;  %v258_v4 = vld [vmem:[%s1271_s1] sm:$0xff]  ;;  %v295_v6 = vand.u32 4294901760, %v233_v3  ;;  %v242_v24 = vmul.f32 %v233_v3, %v233_v3  ;;  %v235_v25 = vadd.f32 %v234_v2, %v233_v3  ;;  %s232_s24 = scalar_lea.vmem [#allocation5], %s844_s21  ;;  %s752_s7 = scalar_lea.hbm %s1274_s4, %s846_s22 }
  0x2f   : > { %977 = vset.pattern.permute.xlu0 %v1095_v1  ;;  %v722_v7 = vld [vmem:[%s1272_s2] sm:$0xff]  ;;  %v261_v8 = vsel %vm259_vm1, %v258_v4, 0  ;;  %869 = vmatpush3.msra.mxu0 %v292_v5  ;;  %v370_v9 = vsub.f32 %v234_v2, %v292_v5  ;;  %s754_s26 = sshll.u32 %s232_s24, 4  ;;  %s740_s8 = scalar_lea.sflag [#allocation4], %s1206_s6  ;;  %s755_s26 = int_to_ptr.vmem [resolvable:$true] %s754_s26 }
  0x30   : > { %725 = vperm.xlu0 %977, %v722_v7   ;;  %v330_v10 = vand.u32 4294901760, %v261_v8  ;;  %v377_v11 = vsub.f32 %v233_v3, %v295_v6  ;;  %v731_v12 = vld [vmem:[%s1273_s3] sm:$0xff]  ;;  %870 = vmatprep.subr.mxu0 %v1093_v0  ;;  %v236_v26 = vrot.slane %v235_v25, 4  ;;  %v244_v27 = vadd.f32 %v243_v23, %v242_v24  ;;  %s1008_s9 = scalar_lea.vmem %s755_s26, 128  ;;  %s1096_s10 = smov [#allocation5]  }
  0x31   : > { %871 = vmatpush3.msra.mxu0 %v295_v6  ;;  %v371_v13 = vand.u32 4294901760, %v370_v9  ;;  %p1009_p8 = scmp.ne.s32.totalorder %s755_s26, %s1008_s9  ;;  %s1012_s11 = sshll.u32 %s1096_s10, 4  ;;  %s1013_s11 = int_to_ptr.vmem [resolvable:$false] %s1012_s11 }
  0x32   : > { %v331_v14 = vsub.f32 %v261_v8, %v330_v10  ;;  %v378_v15 = vand.u32 4294901760, %v377_v11  ;;  %882 = vmatprep.subr.mxu0 %v1093_v0  ;;  %v237_v28 = vadd.f32 %v236_v26, %v235_v25  ;;  %v245_v29 = vrot.slane %v244_v27, 4  ;;  %s1014_s18 = scalar_lea.vmem %s1013_s11, 256  ;;  %p1015_p1 = scmp.lt.s32.totalorder %s755_s26, %s1013_s11 }
  0x33   : > { %v372_v16 = vsub.f32 %v370_v9, %v371_v13  ;;  %p1010_p12 = pnand %p1009_p8, %p1173_p9  ;;  %p1016_p3 = scmp.lt.s32.totalorder %s1014_s18, %s1008_s9 }
  0x34   : > { %734 = vperm.xlu0 %977, %v731_v12   ;;  %v332_v17 = vand.u32 4294901760, %v331_v14  ;;  %v379_v18 = vsub.f32 %v377_v11, %v378_v15  ;;  %v238_v30 = vrot.slane %v237_v28, 2  ;;  %v246_v31 = vadd.f32 %v245_v29, %v244_v27 }
  0x35   : > { %v373_v19 = vand.u32 4294901760, %v372_v16  ;;  %p1011_p0 = pneg %p1010_p12  ;;  %p1017_p5 = por %p1016_p3, %p1015_p1 }
  0x36   : > { %v333_v20 = vsub.f32 %v331_v14, %v332_v17  ;;  %v380_v21 = vand.u32 4294901760, %v379_v18  ;;  %v239_v32 = vadd.f32 %v238_v30, %v237_v28  ;;  %v247_v33 = vrot.slane %v246_v31, 2 }
  0x37   : > { %876 = vmatpush3.msra.mxu1 %v373_v19  ;;  %p1018_p6 = pnand %p1017_p5, %p1011_p0 }
  0x38   : > { %v334_v22 = vand.u32 4294901760, %v333_v20  ;;  %877 = vmatprep.subr.mxu1 %v1093_v0  ;;  %v240_v34 = vrot.slane %v239_v32, 1  ;;  %v248_v35 = vadd.f32 %v247_v33, %v246_v31 }
  0x39   : > { %878 = vmatpush3.msra.mxu1 %v380_v21 }
  0x3a   : > { %873 = vmatmul.mubr.f32.vlgmr.msra.gmra.mxu0 %v334_v22  ;;  %880 = vmatmul.mubr.f32.vlgmr.msra.gmra.mxu1 %v330_v10  ;;  %v241_v36 = vadd.f32 %v240_v34, %v239_v32  ;;  %v249_v37 = vrot.slane %v248_v35, 1 }
  0x3b   : > { %883 = vmatpush3.msra.mxu0 %v370_v9  ;;  %889 = vmatprep.subr.mxu1 %v1093_v0 }
  0x3c   : > { %884 = vmatprep.subr.mxu0 %v1093_v0  ;;  %886 = vmatprep.mubr.msk.f32.mxu0 %vm1094_vm0, %v1093_v0  ;;  %v250_v38 = vadd.f32 %v249_v37, %v248_v35  ;;  %v251_v39 = vmul.f32 0.0625, %v241_v36 }
  0x3d   : > { %885 = vmatpush3.msra.mxu0 %v377_v11  ;;  %890 = vmatpush3.msra.mxu1 %v292_v5 }
  0x3e   : > { %887 = vmatmul.mubr.f32.vlgmr.msra.gmra.mxu0 %v331_v14  ;;  %891 = vmatprep.subr.mxu1 %v1093_v0  ;;  %v252_v40 = vmul.f32 0.0625, %v250_v38  ;;  %v253_v41 = vmul.f32 %v251_v39, %v251_v39 }
  0x3f   : > { %896 = vmatprep.subr.mxu0 %v1093_v0  ;;  %892 = vmatpush3.msra.mxu1 %v295_v6 }
  0x40   : > { %893 = vmatprep.mubr.msk.f32.mxu1 %vm1094_vm0, %v1093_v0  ;;  %897 = vmatpush3.msra.mxu0 %v371_v13  ;;  %v254_v42 = vsub.f32 %v252_v40, %v253_v41 }
  0x41   : > { %894 = vmatmul.mubr.f32.vlgmr.msra.gmra.mxu1 %v332_v17  ;;  %898 = vmatprep.subr.mxu0 %v1093_v0 }
  0x42   : > { %903 = vmatprep.subr.mxu1 %v1093_v0  ;;  %899 = vmatpush3.msra.mxu0 %v378_v15  ;;  %v255_v43 = vmax.f32 %v254_v42, 0.0 }
  0x43   : > { %900 = vmatprep.mubr.msk.f32.mxu0 %vm1094_vm0, %v1093_v0  ;;  %904 = vmatpush3.msra.mxu1 %v292_v5 }
  0x44   : > { %901 = vmatmul.mubr.f32.vlgmr.msra.gmra.mxu0 %v330_v10  ;;  %905 = vmatprep.subr.mxu1 %v1093_v0  ;;  %v256_v44 = vadd.f32 1e-05, %v255_v43 }
  0x45   : > { %907 = vmatprep.mubr.msk.f32.mxu1 %vm1094_vm0, %v1093_v0  ;;  %906 = vmatpush3.msra.mxu1 %v295_v6 }
  0x46   : > { %908 = vmatmul.mubr.f32.vlgmr.msra.gmra.mxu1 %v330_v10  ;;  %978 = vrsqrt.f32 %v256_v44 }
  0x53   : > { %v979_v63 = vpop.eup %978 }
  0xab   : > { %v726_v57 = vpop.permute.xlu0 %725 }
  0xac   : > { %v728_v59 = vmul.f32 %v726_v57, %v251_v39 }
  0xaf   : > { %v735_v3 = vpop.permute.xlu0 %734 }
  0xfa   : > { %v336_v45 = vpop.f32.mrf.mxu0  ;;  %v417_v46 = vpop.f32.mrf.mxu1 }
  0xfb   : > { %v418_v48 = vadd.f32 %v417_v46, %v336_v45 }
  0xfc   : > { %v874_v47 = vpop.f32.mrf.mxu0  ;;  %v881_v49 = vpop.f32.mrf.mxu1 }
  0xfe   : > { %v493_v50 = vpop.f32.mrf.mxu0 }
  0xff   : > { %v494_v51 = vadd.f32 %v493_v50, %v418_v48 }
 0x100   : > { %v888_v52 = vpop.f32.mrf.mxu0 }
 0x101   : > { %v568_v53 = vpop.f32.mrf.mxu1 }
 0x102   : > { %v569_v54 = vadd.f32 %v568_v53, %v494_v51 }
 0x103   : > { %v895_v55 = vpop.f32.mrf.mxu1 }
 0x104   : > { %v645_v56 = vpop.f32.mrf.mxu0 }
 0x105   : > { %v646_v58 = vadd.f32 %v645_v56, %v569_v54 }
 0x106   : > { %v902_v60 = vpop.f32.mrf.mxu0  ;;  %v718_v61 = vpop.f32.mrf.mxu1 }
 0x107   : > { %v719_v62 = vadd.f32 %v718_v61, %v646_v58 }
 0x108   : > { %v909_v0 = vpop.f32.mrf.mxu1 }
 0x109   : > { %v729_v1 = vsub.f32 %v719_v62, %v728_v59 }
 0x10b   : > { %v730_v2 = vmul.f32 %v979_v63, %v729_v1 }
 0x10d   : > { %v737_v4 = vadd.f32 %v735_v3, %v730_v2 }
 0x10f   : > { %738 = vst [vmem:[%s232_s24] sm:$0xff] %v737_v4 }
 0x110   : > { %1021 = shalt.err (!%p1018_p6)
}
 0x111   : > { %s1022_s27 = scalar_lea.hbm %s752_s7, 128  ;;  %s1026_s13 = scalar_lea.hbm %s1274_s4, 256 }
 0x112   : > { %p1023_p7 = scmp.ne.s32.totalorder %s752_s7, %s1022_s27  ;;  %p1027_p13 = scmp.lt.s32.totalorder %s752_s7, %s1274_s4 }
 0x113   : > { %p1028_p2 = scmp.lt.s32.totalorder %s1026_s13, %s1022_s27 }
 0x114   : > { %p1024_p10 = pnand %p1023_p7, %p1173_p9 }
 0x115   : > { %p1029_p8 = por %p1028_p2, %p1027_p13 }
 0x116   : > { %p1025_p4 = pneg %p1024_p10 }
 0x118   : > { %p1030_p12 = pnand %p1029_p8, %p1025_p4 }
 0x11a   : > { %1033 = shalt.err (!%p1030_p12)
}
 0x11b   : > { %912 = dma.vmem_to_hbm [thread:$0]  (%p1173_p9), %s755_s26, 128, %s752_s7, %s740_s8  }
 0x11c PF: > { %s766_s22 = sand.u32 1, %s1068_s15   ;;  %p1280_p0 = scmp.ge.s32.totalorder %s1088_s20, 2 }
 0x11d   : > { %s767_s24 = scalar_lea.sflag [#allocation4], %s766_s22 }
 0x11e   : > { %p919_p1 = pnand %p1280_p0, %p1180_p11 }
 0x120   : > { %p920_p3 = pneg %p919_p1 }
 0x122   : > { %1063 = dma.done.wait (%p920_p3), %s767_s24, 128  }
 0x123   : > { %1065 = vsyncadd (%p920_p3), %s767_s24, 4294967168  ;;  %s20_s20 = sadd.s32 1, %s1088_s20   ;;  %s1281_s15 = smov %s1072_s16 }
 0x124   : > { %p17_p5 = scmp.ge.s32.totalorder %s20_s20, 4   ;;  %s1282_s16 = smov %s1076_s17 }
 0x125   : > { %s1283_s17 = smov %s1178_s29  ;;  %s1284_s18 = smov %s1084_s19 }
 0x126   : > { %s1285_s19 = smov %s1287_s23  ;;  %19 = sbr.rel (!%p17_p5) target bundleno = 6 (0x6), region = 81 }
 0x12b   :  { %772 = vsyncpa [#allocation3], 1 }
 0x12c   :  { %774 = vsyncpa [#allocation3 + $0x1], 1 }
 0x12d   :  { %775 = vsyncpa [#allocation4], 1 }
 0x12e   :  { %777 = vsyncpa [#allocation4 + $0x1], 1 }

</bundles_post_ra>
